<compile_context>
chip_gen: v6e
topology: v6e:2x2x1
jax: 0.10.0
libtpu: 0.0.40
codegen_flags: <defaults>
</compile_context>

<pallas_src>
import functools

import jax
import jax.numpy as jnp
from jax import lax
from jax.experimental import pallas as pl
from jax.experimental.pallas import tpu as pltpu


def _round_up(a, b):
    return (a + b - 1) // b * b


def _ce_binary_kernel(xt_ref, t_ref, out_ref, *, n_valid, tile_n):
    # xt_ref : (2, tile_n) block of x^T, native dtype (class axis on sublanes,
    #          sample axis on lanes -> lane-dense).
    # t_ref  : (1, tile_n) int32 labels, same lane layout.
    # out_ref: (1, 8, 128) f32 per-tile partial-sum block (own block per step).
    i = pl.program_id(0)

    xv = xt_ref[...].astype(jnp.float32)          # upcast in-register after load
    diff = xv[1:2, :] - xv[0:1, :]                # (1, tile_n) = x1 - x0
    labels = t_ref[...]                           # (1, tile_n) int32 in {0, 1}

    # d = x_other - x_label = (1 - 2*t) * (x1 - x0)
    sgn = (1 - 2 * labels).astype(jnp.float32)
    d = sgn * diff

    # Mask the ragged tail of the last tile (global sample index >= n_valid).
    lane = lax.broadcasted_iota(jnp.int32, (1, tile_n), 1)
    valid = (i * tile_n + lane) < n_valid
    d = jnp.where(valid, d, 0.0)                  # mask BEFORE exp/log -> NaN-safe

    # loss_i = logsumexp(x_i0, x_i1) - x_i[t_i] = softplus(d), stable form.
    # (log(1+z) instead of log1p keeps the lowering maximally vanilla; the
    #  accuracy delta is negligible at f32 for this loss.)
    per_lane = jnp.maximum(d, 0.0) + jnp.log(1.0 + jnp.exp(-jnp.abs(d)))
    per_lane = jnp.where(valid, per_lane, 0.0)

    s = jnp.sum(per_lane)                         # one tiny cross-lane tree / tile

    # Lane-dense (1, 8, 128) partial block: scalar at [0, 0, 0], zeros elsewhere.
    sub_ids = lax.broadcasted_iota(jnp.int32, (1, 8, 128), 1)
    lane_ids = lax.broadcasted_iota(jnp.int32, (1, 8, 128), 2)
    out_ref[...] = jnp.where((sub_ids == 0) & (lane_ids == 0), s, 0.0)


def cross_entropy_loss(x, t, *, tile_n=64 * 1024):
    """x: (N, 2) predictions (any float dtype); t: (N,) int labels in {0, 1}.
    Returns scalar float32 loss = -sum(log(softmax(x, axis=1)) * one_hot(t))."""
    n, c = x.shape
    assert c == 2, "This module is binary CE (C == 2); see TODO for general C."

    # Lane-dense layout: sample axis -> 128-lane axis.  x.T is a small one-time
    # relayout (fused upstream in a real pipeline); labels reshape is free.
    xt = x.T                                      # (2, N), native dtype
    t2 = t.reshape(1, n).astype(jnp.int32)        # (1, N)

    # Tile over samples: multiple of 128 lanes, clamped for small N.
    # VMEM at tile_n=64K: x block 2 MiB + t block 2 MiB (sublane-padded),
    # x2 double-buffering = 8 MiB + elementwise temps -> < 32 MiB everywhere
    # (v7x's 64 MiB physical / 32 MiB scoped included).
    tn = min(_round_up(max(tile_n, 128), 128), _round_up(n, 128))
    num_tiles = (n + tn - 1) // tn                # ragged tail masked in-kernel

    kernel = functools.partial(_ce_binary_kernel, n_valid=n, tile_n=tn)
    partials = pl.pallas_call(
        kernel,
        out_shape=jax.ShapeDtypeStruct((num_tiles, 8, 128), jnp.float32),
        grid=(num_tiles,),
        in_specs=[
            pl.BlockSpec((2, tn), lambda i: (0, i)),     # x^T, lane-dense
            pl.BlockSpec((1, tn), lambda i: (0, i)),     # labels, lane-dense
        ],
        # One independent lane-dense partial block per grid step -> safe to
        # mark the grid "parallel" (uses both TensorCores on v7x, neutral on
        # single-TC v5e/v6e).
        out_specs=pl.BlockSpec((1, 8, 128), lambda i: (i, 0, 0)),
        compiler_params=pltpu.CompilerParams(
            dimension_semantics=("parallel",),
            vmem_limit_bytes=32 * 1024 * 1024,
        ),
    )(xt, t2)
    # Tiny final reduction over per-tile partials (num_tiles x 4 KiB).
    return jnp.sum(partials)


def _reference_loss(x, t):
    """Pure-JAX replica of the PyTorch module's forward."""
    c = x.shape[1]
    onehot = jax.nn.one_hot(t, c, dtype=jnp.float32)
    xf = x.astype(jnp.float32)
    maxv = jnp.max(xf, axis=1, keepdims=True)
    exps = jnp.exp(xf - maxv)
    p = exps / jnp.sum(exps, axis=1, keepdims=True)
    return -jnp.sum(jnp.log(p) * onehot)


if __name__ == "__main__":
    key = jax.random.PRNGKey(0)
    kx, kt = jax.random.split(key)

    # Module convention: (n_samples x 2) predictions, binary labels in {0, 1}.
    N, C = 70, 2
    x = jax.random.normal(kx, (N, C), dtype=jnp.float32)
    t = jax.random.randint(kt, (N,), 0, C, dtype=jnp.int32)
    t = t.at[0].set(0).at[1].set(1)   # ensure t.max()+1 == C as the torch code assumes

    # Single ragged tile (N=70 < 128 lanes), no wrapper-side padding.
    loss = cross_entropy_loss(x, t)
    jax.block_until_ready(loss)
    ref = _reference_loss(x, t)
    assert jnp.allclose(loss, ref, rtol=1e-5, atol=1e-4), (loss, ref)

    # Multi-tile grid with a ragged last tile + per-tile partial sums.
    kx2, kt2 = jax.random.split(kt)
    N2 = 1000
    x2 = 3.0 * jax.random.normal(kx2, (N2, C), dtype=jnp.float32)
    t2 = jax.random.randint(kt2, (N2,), 0, C, dtype=jnp.int32)
    loss2 = cross_entropy_loss(x2, t2, tile_n=256)
    jax.block_until_ready(loss2)
    ref2 = _reference_loss(x2, t2)
    assert jnp.allclose(loss2, ref2, rtol=1e-5, atol=1e-3), (loss2, ref2)

    # Exactly-divisible multi-tile path.
    kx3, kt3 = jax.random.split(kt2)
    N3 = 512
    x3 = jax.random.normal(kx3, (N3, C), dtype=jnp.float32)
    t3 = jax.random.randint(kt3, (N3,), 0, C, dtype=jnp.int32)
    loss3 = cross_entropy_loss(x3, t3, tile_n=128)
    jax.block_until_ready(loss3)
    ref3 = _reference_loss(x3, t3)
    assert jnp.allclose(loss3, ref3, rtol=1e-5, atol=1e-3), (loss3, ref3)

    print("KERNEL_OK")
</pallas_src>

<mosaic_0001>
module attributes {stable_mosaic.version = 11 : i64} {
  func.func @_ce_binary_kernel(%arg0: i32, %arg1: memref<2x128xf32, #tpu.memory_space<vmem>>, %arg2: memref<1x128xi32, #tpu.memory_space<vmem>>, %arg3: memref<1x8x128xf32, #tpu.memory_space<vmem>>) attributes {dimension_semantics = [#tpu.dimension_semantics<parallel>], iteration_bounds = array<i64: 1>, scalar_prefetch = 0 : i64, scratch_operands = 0 : i64, tpu.core_type = #tpu.core_type<tc>, window_params = [{transform_indices = @transform_0, window_bounds = array<i64: 2, 128>}, {transform_indices = @transform_1, window_bounds = array<i64: 1, 128>}, {transform_indices = @transform_2, window_bounds = array<i64: 1, 8, 128>}]} {
    %c0 = arith.constant 0 : index
    %c0_0 = arith.constant 0 : index
    %0 = vector.load %arg1[%c0, %c0_0] : memref<2x128xf32, #tpu.memory_space<vmem>>, vector<2x128xf32>
    %1 = vector.extract_strided_slice %0 {offsets = [1, 0], sizes = [1, 128], strides = [1, 1]} : vector<2x128xf32> to vector<1x128xf32>
    %2 = vector.extract_strided_slice %0 {offsets = [0, 0], sizes = [1, 128], strides = [1, 1]} : vector<2x128xf32> to vector<1x128xf32>
    %3 = arith.subf %1, %2 : vector<1x128xf32>
    %c0_1 = arith.constant 0 : index
    %c0_2 = arith.constant 0 : index
    %4 = vector.load %arg2[%c0_1, %c0_2] : memref<1x128xi32, #tpu.memory_space<vmem>>, vector<1x128xi32>
    %c2_i32 = arith.constant 2 : i32
    %5 = vector.broadcast %c2_i32 : i32 to vector<1x128xi32>
    %6 = arith.muli %5, %4 : vector<1x128xi32>
    %c1_i32 = arith.constant 1 : i32
    %7 = vector.broadcast %c1_i32 : i32 to vector<1x128xi32>
    %8 = arith.subi %7, %6 : vector<1x128xi32>
    %9 = arith.sitofp %8 : vector<1x128xi32> to vector<1x128xf32>
    %10 = arith.mulf %9, %3 : vector<1x128xf32>
    %11 = tpu.iota {dimensions = array<i32: 1>} : vector<1x128xi32>
    %c128_i32 = arith.constant 128 : i32
    %12 = arith.muli %arg0, %c128_i32 : i32
    %13 = vector.broadcast %12 : i32 to vector<1x128xi32>
    %14 = arith.addi %13, %11 : vector<1x128xi32>
    %c70_i32 = arith.constant 70 : i32
    %15 = vector.broadcast %c70_i32 : i32 to vector<1x128xi32>
    %16 = arith.cmpi slt, %14, %15 : vector<1x128xi32>
    %cst = arith.constant 0.000000e+00 : f32
    %17 = vector.broadcast %cst : f32 to vector<1x128xf32>
    %18 = arith.select %16, %10, %17 : vector<1x128xi1>, vector<1x128xf32>
    %cst_3 = arith.constant 0.000000e+00 : f32
    %19 = vector.broadcast %cst_3 : f32 to vector<1x128xf32>
    %20 = arith.maximumf %18, %19 : vector<1x128xf32>
    %21 = math.absf %18 : vector<1x128xf32>
    %cst_4 = arith.constant 0.000000e+00 : f32
    %22 = vector.broadcast %cst_4 : f32 to vector<1x128xf32>
    %23 = arith.subf %22, %21 : vector<1x128xf32>
    %24 = math.exp %23 : vector<1x128xf32>
    %cst_5 = arith.constant 1.000000e+00 : f32
    %25 = vector.broadcast %cst_5 : f32 to vector<1x128xf32>
    %26 = arith.addf %25, %24 : vector<1x128xf32>
    %27 = math.log %26 : vector<1x128xf32>
    %28 = arith.addf %20, %27 : vector<1x128xf32>
    %cst_6 = arith.constant 0.000000e+00 : f32
    %29 = vector.broadcast %cst_6 : f32 to vector<1x128xf32>
    %30 = arith.select %16, %28, %29 : vector<1x128xi1>, vector<1x128xf32>
    %31 = vector.shape_cast %30 : vector<1x128xf32> to vector<1x1x128xf32>
    %cst_7 = arith.constant dense<0.000000e+00> : vector<1xf32>
    %32 = vector.multi_reduction <add>, %31, %cst_7 [1, 2] : vector<1x1x128xf32> to vector<1xf32>
    %33 = vector.shape_cast %32 : vector<1xf32> to vector<1x1x1xf32>
    %34 = vector.extract %33[0, 0, 0] : f32 from vector<1x1x1xf32>
    %35 = tpu.iota {dimensions = array<i32: 1>} : vector<1x8x128xi32>
    %36 = tpu.iota {dimensions = array<i32: 2>} : vector<1x8x128xi32>
    %c0_i32 = arith.constant 0 : i32
    %37 = vector.broadcast %c0_i32 : i32 to vector<1x8x128xi32>
    %38 = arith.cmpi eq, %35, %37 : vector<1x8x128xi32>
    %c0_i32_8 = arith.constant 0 : i32
    %39 = vector.broadcast %c0_i32_8 : i32 to vector<1x8x128xi32>
    %40 = arith.cmpi eq, %36, %39 : vector<1x8x128xi32>
    %41 = arith.andi %38, %40 : vector<1x8x128xi1>
    %cst_9 = arith.constant 0.000000e+00 : f32
    %42 = vector.broadcast %34 : f32 to vector<1x8x128xf32>
    %43 = vector.broadcast %cst_9 : f32 to vector<1x8x128xf32>
    %44 = arith.select %41, %42, %43 : vector<1x8x128xi1>, vector<1x8x128xf32>
    %c0_10 = arith.constant 0 : index
    %c0_11 = arith.constant 0 : index
    %c0_12 = arith.constant 0 : index
    %45 = vector.load %arg3[%c0_10, %c0_11, %c0_12] : memref<1x8x128xf32, #tpu.memory_space<vmem>>, vector<1x8x128xf32>
    tpu.vector_store %arg3[%c0_10, %c0_11, %c0_12], %44 {strides = array<i32>} : memref<1x8x128xf32, #tpu.memory_space<vmem>>, vector<1x8x128xf32>,
    return
  }
  func.func @transform_0(%arg0: i32) -> (i32, i32) {
    %c0_i32 = arith.constant 0 : i32
    %c0_i32_0 = arith.constant 0 : i32
    return %c0_i32, %arg0 : i32, i32
  }
  func.func @transform_1(%arg0: i32) -> (i32, i32) {
    %c0_i32 = arith.constant 0 : i32
    %c0_i32_0 = arith.constant 0 : i32
    return %c0_i32, %arg0 : i32, i32
  }
  func.func @transform_2(%arg0: i32) -> (i32, i32, i32) {
    %c0_i32 = arith.constant 0 : i32
    %c0_i32_0 = arith.constant 0 : i32
    %c0_i32_1 = arith.constant 0 : i32
    return %arg0, %c0_i32, %c0_i32_0 : i32, i32, i32
  }
}

</mosaic_0001>

<bundles_post_ra>
// kernel: tpu_custom_call.1
= control target key start
LH: loop header
LB: loop body
LE: loop exit
PB: predicated region body
PF: predicated region fallthrough
CT: control target
= control target key end

     0   :  { %7 = vsyncpa [#allocation3], 0  ;;  %s182_s0 = inlined_call_operand.hbm [shape: f32[2,70], index: 0, kind: input, shape index: {}]   ;;  %s183_s1 = inlined_call_operand.vmem [shape: s32[1,70], index: 1, kind: input, shape index: {}]   ;;  %s184_s2 = inlined_call_operand.hbm [shape: f32[1,8,128], index: 2, kind: output, shape index: {}]  }
   0x1   :  { %8 = vsyncpa [#allocation4], 0  ;;  %s155_s9 = smov [#allocation2]  }
   0x2   :  { %s15_s10 = sshll.u32 %s155_s9, 4  ;;  %s16_s10 = int_to_ptr.vmem [resolvable:$true] %s15_s10 }
   0x3   :  { %s119_s11 = scalar_lea.vmem %s16_s10, 32  ;;  %p124_p1 = scmp.lt.s32.totalorder %s16_s10, %s16_s10 }
   0x4   :  { %p120_p0 = scmp.ne.s32.totalorder %s16_s10, %s119_s11  ;;  %p125_p2 = scmp.lt.s32.totalorder %s119_s11, %s119_s11 }
   0x6   :  { %p126_p3 = por %p125_p2, %p124_p1 }
   0x8   :  { %p127_p4 = pnand %p126_p3, %p120_p0 }
   0xa   :  { %130 = shalt.err (!%p127_p4)
}
   0xb   :  { %18 = dma.hbm_to_vmem [thread:$0]  %s182_s0, 32, %s16_s10, [#allocation3]  }
   0xc   :  { %151 = dma.done.wait [#allocation3], 32  }
   0xd   :  { %152 = vsyncadd [#allocation3], 4294967264  ;;  %v37_v0 = vlaneseq  ;;  %v156_v1 = vmov 1966171168   ;;  %v24_v5 = vld [vmem:[#allocation2] sm:$0x3] }
   0xe   :  { %v35_v2 = vunpack.c.l.s4 %v156_v1  ;;  %v29_v6 = vld [vmem:[%s183_s1] sm:$0x1]  ;;  %v26_v7 = vrot.slane %v24_v5, 7  ;;  %vm68_vm1 = vcmask 1040384   ;;  %s157_s0 = smov [#allocation5]  }
   0xf   :  { %v38_v4 = vshrl.u32 %v37_v0, 7  ;;  %v30_v8 = vmul.u32 2, %v29_v6  ;;  %v52_v13 = vand.u32 127, %v37_v0  ;;  %s93_s1 = sshll.u32 %s157_s0, 4  ;;  %s94_s1 = int_to_ptr.vmem [resolvable:$true] %s93_s1 }
  0x10   :  { %v36_v3 = vunpack.c.0.s8 %v35_v2  ;;  %v28_v10 = vsub.f32 %v24_v5, %v26_v7  ;;  %s131_s17 = scalar_lea.vmem %s94_s1, 128  ;;  %p136_p6 = scmp.lt.s32.totalorder %s94_s1, %s94_s1 }
  0x11   :  { %v31_v11 = vsub.s32 1, %v30_v8  ;;  %vm56_vm0 = vcmp.lt.s32.totalorder %v52_v13, 70  ;;  %vm81_vm2 = vcmp.eq.s32.totalorder %v38_v4, 0  ;;  %vm82_vm3 = vcmp.eq.s32.totalorder %v52_v13, 0  ;;  %p132_p5 = scmp.ne.s32.totalorder %s94_s1, %s131_s17  ;;  %p137_p7 = scmp.lt.s32.totalorder %s131_s17, %s131_s17 }
  0x12   :  { %v39_v9 = vsub.s32 %v36_v3, %v38_v4  ;;  %vm83_vm4 = vmand %vm81_vm2, %vm82_vm3 }
  0x13   :  { %v32_v14 = vcvt.s32.f32 %v31_v11  ;;  %p138_p8 = por %p137_p7, %p136_p6 }
  0x14   :  { %v40_v12 = vrot.slane %v28_v10, %v39_v9 }
  0x15   :  { %p139_p9 = pnand %p138_p8, %p132_p5 }
  0x16   :  { %v41_v15 = vcombine.high %v40_v12, %v40_v12 }
  0x18   :  { %v48_v16 = vrot.slane %v41_v15, %v39_v9 }
  0x1a   :  { %v50_v17 = vmul.f32 %v48_v16, %v32_v14 }
  0x1c   :  { %v57_v18 = vsel %vm56_vm0, %v50_v17, 0.0 }
  0x1d   :  { %v59_v19 = vand.u32 2147483647, %v57_v18  ;;  %v58_v24 = vmax.f32 %v57_v18, 0.0 }
  0x1f   :  { %v60_v20 = vsub.f32 0.0, %v59_v19 }
  0x21   :  { %v61_v21 = vmul.f32 1.442695, %v60_v20 }
  0x23   :  { %107 = vpow2.f32 %v61_v21 }
  0x30   :  { %v108_v22 = vpop.eup %107 }
  0x31   :  { %v63_v23 = vadd.f32 1.0, %v108_v22 }
  0x33   :  { %109 = vlog2.f32 %v63_v23 }
  0x40   :  { %v110_v25 = vpop.eup %109 }
  0x41   :  { %v65_v26 = vmul.f32 0.6931472, %v110_v25 }
  0x43   :  { %v66_v27 = vadd.f32 %v65_v26, %v58_v24 }
  0x45   :  { %v67_v28 = vsel %vm56_vm0, %v66_v27, 0.0 }
  0x46   :  { %v69_v29 = vsel %vm68_vm1, %v67_v28, 0.0 }
  0x47   :  { %70 = vadd.xlane.f32.xlu0 %v69_v29 }
  0xd0   :  { %v71_v30 = vpop.xlane.xlu0 %70 }
  0xd1   :  { %v72_v31 = vrot.slane %v71_v30, 4 }
  0xd3   :  { %v73_v32 = vadd.f32 %v72_v31, %v71_v30 }
  0xd5   :  { %v74_v33 = vrot.slane %v73_v32, 2 }
  0xd7   :  { %v75_v34 = vadd.f32 %v74_v33, %v73_v32 }
  0xd9   :  { %v76_v35 = vrot.slane %v75_v34, 1 }
  0xdb   :  { %v77_v36 = vadd.f32 %v76_v35, %v75_v34 }
  0xdd   :  { %102 = vpush %v77_v36 }
 0x10e   :  { %s103_s16 = spop %102 }
 0x10f   :  { %v84_v37 = vstv %s103_s16 }
 0x110   :  { %v85_v38 = vsel %vm83_vm4, %v84_v37, 0.0 }
 0x111   :  { %86 = vst [vmem:[#allocation5] sm:$0xff] %v85_v38 }
 0x112   :  { %142 = shalt.err (!%p139_p9)
}
 0x113   :  { %96 = dma.vmem_to_hbm [thread:$0]  %s94_s1, 128, %s184_s2, [#allocation4]  }
 0x114   :  { %153 = dma.done.wait [#allocation4], 128  }
 0x115   :  { %154 = vsyncadd [#allocation4], 4294967168 }
 0x116   :  { %100 = vsyncpa [#allocation3], 1 }
 0x117   :  { %101 = vsyncpa [#allocation4], 1 }

</bundles_post_ra>
